<compile_context>
chip_gen: v7x
topology: tpu7x:2x2x1
jax: 0.10.0
libtpu: 0.0.40
codegen_flags: <defaults>
</compile_context>

<pallas_src>
import functools

import jax
import jax.numpy as jnp
from jax.experimental import pallas as pl
from jax.experimental.pallas import tpu as pltpu  # noqa: F401  (TPU backend)


# ----------------------------- Pallas kernel --------------------------------


def _layer_norm(x, gamma, beta, eps=1e-5):
    mu = jnp.mean(x, axis=-1, keepdims=True)
    var = jnp.mean((x - mu) ** 2, axis=-1, keepdims=True)
    return (x - mu) * jax.lax.rsqrt(var + eps) * gamma + beta


def make_decoder_kernel(output_dim, use_layer_norm=True):
    """Fused ClassificationHead + prediction activation.

    Kernel refs (all full-extent VMEM blocks, single invocation):
      x_ref   : (B, H)   encoded representation
      w1/b1   : (H, 2H), (1, 2H)
      ln1     : (2, 2H)  [gamma; beta]
      w2/b2   : (2H, H), (1, H)
      ln2     : (2, H)
      w3/b3   : (H, C),  (1, C)
      outs    : logits (B, C), predictions (B, C)
    """

    def decoder_kernel(x_ref, w1_ref, b1_ref, ln1_ref, w2_ref, b2_ref, ln2_ref,
                       w3_ref, b3_ref, logits_ref, preds_ref):
        x = x_ref[...]

        # --- hidden layer 1: Linear -> LayerNorm -> ReLU (dropout = identity)
        h1 = jnp.dot(x, w1_ref[...], preferred_element_type=jnp.float32) + b1_ref[...]
        if use_layer_norm:
            h1 = _layer_norm(h1, ln1_ref[0], ln1_ref[1])
        h1 = jnp.maximum(h1, 0.0)

        # --- hidden layer 2: Linear -> LayerNorm -> ReLU (dropout = identity)
        h2 = jnp.dot(h1, w2_ref[...], preferred_element_type=jnp.float32) + b2_ref[...]
        if use_layer_norm:
            h2 = _layer_norm(h2, ln2_ref[0], ln2_ref[1])
        h2 = jnp.maximum(h2, 0.0)

        # --- output layer: Linear -> logits
        logits = (
            jnp.dot(h2, w3_ref[...], preferred_element_type=jnp.float32)
            + b3_ref[...]
        )
        logits_ref[...] = logits

        # --- predictions (f32 softmax/sigmoid, fused in the same kernel)
        if output_dim == 1:
            preds_ref[...] = jax.nn.sigmoid(logits)
        else:
            s = logits - jnp.max(logits, axis=-1, keepdims=True)
            e = jnp.exp(s)
            preds_ref[...] = e / jnp.sum(e, axis=-1, keepdims=True)

    return decoder_kernel


# ------------------------------ full forward --------------------------------


@functools.partial(jax.jit, static_argnames=("output_dim", "use_layer_norm"))
def tagan_decoder_forward(encoded, params, *, output_dim, use_layer_norm=True):
    b, _ = encoded.shape
    logits, preds = pl.pallas_call(
        make_decoder_kernel(output_dim, use_layer_norm),
        out_shape=(
            jax.ShapeDtypeStruct((b, output_dim), jnp.float32),
            jax.ShapeDtypeStruct((b, output_dim), jnp.float32),
        ),
    )(
        encoded,
        params["w1"], params["b1"], params["ln1"],
        params["w2"], params["b2"], params["ln2"],
        params["w3"], params["b3"],
    )
    # loss is None when no labels are provided (eval path of the reference).
    return {"logits": logits, "predictions": preds, "loss": None}


# ------------------------------ param init ----------------------------------


def _xavier(key, shape):
    fan_in, fan_out = shape
    limit = (6.0 / (fan_in + fan_out)) ** 0.5
    return jax.random.uniform(key, shape, jnp.float32, -limit, limit)


def init_params(key, hidden_dim, output_dim):
    h1 = hidden_dim * 2      # hidden_dims[0]
    h2 = hidden_dim          # hidden_dims[1]
    k = iter(jax.random.split(key, 8))
    return {
        "w1": _xavier(next(k), (hidden_dim, h1)),
        "b1": jnp.zeros((1, h1), jnp.float32),
        "ln1": jnp.stack(
            [jnp.ones((h1,), jnp.float32), jnp.zeros((h1,), jnp.float32)]
        ),
        "w2": _xavier(next(k), (h1, h2)),
        "b2": jnp.zeros((1, h2), jnp.float32),
        "ln2": jnp.stack(
            [jnp.ones((h2,), jnp.float32), jnp.zeros((h2,), jnp.float32)]
        ),
        "w3": _xavier(next(k), (h2, output_dim)),
        "b3": jnp.zeros((1, output_dim), jnp.float32),
    }


# --------------------------------- main --------------------------------------


if __name__ == "__main__":
    # Small config consistent with the module: B=8 encoded node/graph vectors,
    # hidden_dim=32, output_dim=4 (multi-class -> softmax predictions).
    B, H, C = 8, 32, 4

    key = jax.random.PRNGKey(0)
    k_x, k_p = jax.random.split(key)

    encoded = jax.random.normal(k_x, (B, H), jnp.float32)
    params = init_params(k_p, H, C)

    out = tagan_decoder_forward(encoded, params, output_dim=C)
    logits = jax.block_until_ready(out["logits"])
    preds = jax.block_until_ready(out["predictions"])

    assert logits.shape == (B, C), logits.shape
    assert preds.shape == (B, C), preds.shape
    assert out["loss"] is None
    assert bool(jnp.all(jnp.isfinite(logits)))
    assert bool(jnp.all(jnp.isfinite(preds)))
    # softmax rows sum to 1
    assert bool(jnp.all(jnp.abs(jnp.sum(preds, axis=-1) - 1.0) < 1e-4))
    print("KERNEL_OK")
</pallas_src>

<mosaic_0001>
module attributes {stable_mosaic.version = 11 : i64} {
  func.func @decoder_kernel(%arg0: memref<8x32xf32, #tpu.memory_space<vmem>>, %arg1: memref<32x64xf32, #tpu.memory_space<vmem>>, %arg2: memref<1x64xf32, #tpu.memory_space<vmem>>, %arg3: memref<2x64xf32, #tpu.memory_space<vmem>>, %arg4: memref<64x32xf32, #tpu.memory_space<vmem>>, %arg5: memref<1x32xf32, #tpu.memory_space<vmem>>, %arg6: memref<2x32xf32, #tpu.memory_space<vmem>>, %arg7: memref<32x4xf32, #tpu.memory_space<vmem>>, %arg8: memref<1x4xf32, #tpu.memory_space<vmem>>, %arg9: memref<8x4xf32, #tpu.memory_space<vmem>>, %arg10: memref<8x4xf32, #tpu.memory_space<vmem>>) attributes {dimension_semantics = [], scalar_prefetch = 0 : i64, scratch_operands = 0 : i64, tpu.core_type = #tpu.core_type<tc>} {
    %c0 = arith.constant 0 : index
    %c0_0 = arith.constant 0 : index
    %0 = vector.load %arg0[%c0, %c0_0] : memref<8x32xf32, #tpu.memory_space<vmem>>, vector<8x32xf32>
    %c0_1 = arith.constant 0 : index
    %c0_2 = arith.constant 0 : index
    %1 = vector.load %arg1[%c0_1, %c0_2] : memref<32x64xf32, #tpu.memory_space<vmem>>, vector<32x64xf32>
    %cst = arith.constant dense<0.000000e+00> : vector<8x64xf32>
    %2 = tpu.matmul %0, %1, %cst {dimension_numbers = #tpu.dot_dimension_numbers<[1], [0], [0], [1], [0, 0, 1, 1], [], []>} : vector<8x32xf32>, vector<32x64xf32>, vector<8x64xf32> -> vector<8x64xf32>
    %c0_3 = arith.constant 0 : index
    %c0_4 = arith.constant 0 : index
    %3 = vector.load %arg2[%c0_3, %c0_4] : memref<1x64xf32, #tpu.memory_space<vmem>>, vector<1x64xf32>
    %4 = vector.broadcast %3 : vector<1x64xf32> to vector<8x64xf32>
    %5 = arith.addf %2, %4 : vector<8x64xf32>
    %c0_5 = arith.constant 0 : index
    %c0_6 = arith.constant 0 : index
    %6 = vector.load %arg3[%c0_5, %c0_6] : memref<2x64xf32, #tpu.memory_space<vmem>>, vector<1x64xf32>
    %7 = vector.shape_cast %6 : vector<1x64xf32> to vector<64xf32>
    %c1 = arith.constant 1 : index
    %c0_7 = arith.constant 0 : index
    %8 = vector.load %arg3[%c1, %c0_7] : memref<2x64xf32, #tpu.memory_space<vmem>>, vector<1x64xf32>
    %9 = vector.shape_cast %8 : vector<1x64xf32> to vector<64xf32>
    %cst_8 = arith.constant dense<0.000000e+00> : vector<8xf32>
    %10 = vector.multi_reduction <add>, %5, %cst_8 [1] : vector<8x64xf32> to vector<8xf32>
    %11 = vector.shape_cast %10 : vector<8xf32> to vector<8x1xf32>
    %cst_9 = arith.constant 6.400000e+01 : f32
    %12 = vector.broadcast %cst_9 : f32 to vector<8x1xf32>
    %13 = arith.divf %11, %12 : vector<8x1xf32>
    %14 = vector.broadcast %13 : vector<8x1xf32> to vector<8x64xf32>
    %15 = arith.subf %5, %14 : vector<8x64xf32>
    %16 = arith.mulf %15, %15 : vector<8x64xf32>
    %cst_10 = arith.constant dense<0.000000e+00> : vector<8xf32>
    %17 = vector.multi_reduction <add>, %16, %cst_10 [1] : vector<8x64xf32> to vector<8xf32>
    %18 = vector.shape_cast %17 : vector<8xf32> to vector<8x1xf32>
    %cst_11 = arith.constant 6.400000e+01 : f32
    %19 = vector.broadcast %cst_11 : f32 to vector<8x1xf32>
    %20 = arith.divf %18, %19 : vector<8x1xf32>
    %21 = vector.broadcast %13 : vector<8x1xf32> to vector<8x64xf32>
    %22 = arith.subf %5, %21 : vector<8x64xf32>
    %cst_12 = arith.constant 9.99999974E-6 : f32
    %23 = vector.broadcast %cst_12 : f32 to vector<8x1xf32>
    %24 = arith.addf %20, %23 : vector<8x1xf32>
    %25 = math.rsqrt %24 : vector<8x1xf32>
    %26 = vector.broadcast %25 : vector<8x1xf32> to vector<8x64xf32>
    %27 = arith.mulf %22, %26 : vector<8x64xf32>
    %28 = vector.shape_cast %7 : vector<64xf32> to vector<1x64xf32>
    %29 = vector.broadcast %28 : vector<1x64xf32> to vector<8x64xf32>
    %30 = arith.mulf %27, %29 : vector<8x64xf32>
    %31 = vector.shape_cast %9 : vector<64xf32> to vector<1x64xf32>
    %32 = vector.broadcast %31 : vector<1x64xf32> to vector<8x64xf32>
    %33 = arith.addf %30, %32 : vector<8x64xf32>
    %cst_13 = arith.constant 0.000000e+00 : f32
    %34 = vector.broadcast %cst_13 : f32 to vector<8x64xf32>
    %35 = arith.maximumf %33, %34 : vector<8x64xf32>
    %c0_14 = arith.constant 0 : index
    %c0_15 = arith.constant 0 : index
    %36 = vector.load %arg4[%c0_14, %c0_15] : memref<64x32xf32, #tpu.memory_space<vmem>>, vector<64x32xf32>
    %cst_16 = arith.constant dense<0.000000e+00> : vector<8x32xf32>
    %37 = tpu.matmul %35, %36, %cst_16 {dimension_numbers = #tpu.dot_dimension_numbers<[1], [0], [0], [1], [0, 0, 1, 1], [], []>} : vector<8x64xf32>, vector<64x32xf32>, vector<8x32xf32> -> vector<8x32xf32>
    %c0_17 = arith.constant 0 : index
    %c0_18 = arith.constant 0 : index
    %38 = vector.load %arg5[%c0_17, %c0_18] : memref<1x32xf32, #tpu.memory_space<vmem>>, vector<1x32xf32>
    %39 = vector.broadcast %38 : vector<1x32xf32> to vector<8x32xf32>
    %40 = arith.addf %37, %39 : vector<8x32xf32>
    %c0_19 = arith.constant 0 : index
    %c0_20 = arith.constant 0 : index
    %41 = vector.load %arg6[%c0_19, %c0_20] : memref<2x32xf32, #tpu.memory_space<vmem>>, vector<1x32xf32>
    %42 = vector.shape_cast %41 : vector<1x32xf32> to vector<32xf32>
    %c1_21 = arith.constant 1 : index
    %c0_22 = arith.constant 0 : index
    %43 = vector.load %arg6[%c1_21, %c0_22] : memref<2x32xf32, #tpu.memory_space<vmem>>, vector<1x32xf32>
    %44 = vector.shape_cast %43 : vector<1x32xf32> to vector<32xf32>
    %cst_23 = arith.constant dense<0.000000e+00> : vector<8xf32>
    %45 = vector.multi_reduction <add>, %40, %cst_23 [1] : vector<8x32xf32> to vector<8xf32>
    %46 = vector.shape_cast %45 : vector<8xf32> to vector<8x1xf32>
    %cst_24 = arith.constant 3.200000e+01 : f32
    %47 = vector.broadcast %cst_24 : f32 to vector<8x1xf32>
    %48 = arith.divf %46, %47 : vector<8x1xf32>
    %49 = vector.broadcast %48 : vector<8x1xf32> to vector<8x32xf32>
    %50 = arith.subf %40, %49 : vector<8x32xf32>
    %51 = arith.mulf %50, %50 : vector<8x32xf32>
    %cst_25 = arith.constant dense<0.000000e+00> : vector<8xf32>
    %52 = vector.multi_reduction <add>, %51, %cst_25 [1] : vector<8x32xf32> to vector<8xf32>
    %53 = vector.shape_cast %52 : vector<8xf32> to vector<8x1xf32>
    %cst_26 = arith.constant 3.200000e+01 : f32
    %54 = vector.broadcast %cst_26 : f32 to vector<8x1xf32>
    %55 = arith.divf %53, %54 : vector<8x1xf32>
    %56 = vector.broadcast %48 : vector<8x1xf32> to vector<8x32xf32>
    %57 = arith.subf %40, %56 : vector<8x32xf32>
    %cst_27 = arith.constant 9.99999974E-6 : f32
    %58 = vector.broadcast %cst_27 : f32 to vector<8x1xf32>
    %59 = arith.addf %55, %58 : vector<8x1xf32>
    %60 = math.rsqrt %59 : vector<8x1xf32>
    %61 = vector.broadcast %60 : vector<8x1xf32> to vector<8x32xf32>
    %62 = arith.mulf %57, %61 : vector<8x32xf32>
    %63 = vector.shape_cast %42 : vector<32xf32> to vector<1x32xf32>
    %64 = vector.broadcast %63 : vector<1x32xf32> to vector<8x32xf32>
    %65 = arith.mulf %62, %64 : vector<8x32xf32>
    %66 = vector.shape_cast %44 : vector<32xf32> to vector<1x32xf32>
    %67 = vector.broadcast %66 : vector<1x32xf32> to vector<8x32xf32>
    %68 = arith.addf %65, %67 : vector<8x32xf32>
    %cst_28 = arith.constant 0.000000e+00 : f32
    %69 = vector.broadcast %cst_28 : f32 to vector<8x32xf32>
    %70 = arith.maximumf %68, %69 : vector<8x32xf32>
    %c0_29 = arith.constant 0 : index
    %c0_30 = arith.constant 0 : index
    %71 = vector.load %arg7[%c0_29, %c0_30] : memref<32x4xf32, #tpu.memory_space<vmem>>, vector<32x4xf32>
    %cst_31 = arith.constant dense<0.000000e+00> : vector<8x4xf32>
    %72 = tpu.matmul %70, %71, %cst_31 {dimension_numbers = #tpu.dot_dimension_numbers<[1], [0], [0], [1], [0, 0, 1, 1], [], []>} : vector<8x32xf32>, vector<32x4xf32>, vector<8x4xf32> -> vector<8x4xf32>
    %c0_32 = arith.constant 0 : index
    %c0_33 = arith.constant 0 : index
    %73 = vector.load %arg8[%c0_32, %c0_33] : memref<1x4xf32, #tpu.memory_space<vmem>>, vector<1x4xf32>
    %74 = vector.broadcast %73 : vector<1x4xf32> to vector<8x4xf32>
    %75 = arith.addf %72, %74 : vector<8x4xf32>
    %c0_34 = arith.constant 0 : index
    %c0_35 = arith.constant 0 : index
    %76 = vector.load %arg9[%c0_34, %c0_35] : memref<8x4xf32, #tpu.memory_space<vmem>>, vector<8x4xf32>
    tpu.vector_store %arg9[%c0_34, %c0_35], %75 {strides = array<i32>} : memref<8x4xf32, #tpu.memory_space<vmem>>, vector<8x4xf32>,
    %cst_36 = arith.constant dense<0xFF800000> : vector<8xf32>
    %77 = vector.multi_reduction <maximumf>, %75, %cst_36 [1] : vector<8x4xf32> to vector<8xf32>
    %78 = vector.shape_cast %77 : vector<8xf32> to vector<8x1xf32>
    %79 = vector.broadcast %78 : vector<8x1xf32> to vector<8x4xf32>
    %80 = arith.subf %75, %79 : vector<8x4xf32>
    %81 = math.exp %80 : vector<8x4xf32>
    %cst_37 = arith.constant dense<0.000000e+00> : vector<8xf32>
    %82 = vector.multi_reduction <add>, %81, %cst_37 [1] : vector<8x4xf32> to vector<8xf32>
    %83 = vector.shape_cast %82 : vector<8xf32> to vector<8x1xf32>
    %84 = vector.broadcast %83 : vector<8x1xf32> to vector<8x4xf32>
    %85 = arith.divf %81, %84 : vector<8x4xf32>
    %c0_38 = arith.constant 0 : index
    %c0_39 = arith.constant 0 : index
    %86 = vector.load %arg10[%c0_38, %c0_39] : memref<8x4xf32, #tpu.memory_space<vmem>>, vector<8x4xf32>
    tpu.vector_store %arg10[%c0_38, %c0_39], %85 {strides = array<i32>} : memref<8x4xf32, #tpu.memory_space<vmem>>, vector<8x4xf32>,
    return
  }
}

</mosaic_0001>

<bundles_post_ra>
// kernel: tagan_decoder_forward.1
= control target key start
LH: loop header
LB: loop body
LE: loop exit
PB: predicated region body
PF: predicated region fallthrough
CT: control target
= control target key end

     0   :  { %v474_v0 = vmov 0.0|0.0   ;;  %vm475_vm0 = vmmov 0   ;;  %v476_v4 = vmov 0.0   ;;  %vm46_vm1 = vcmask 261120   ;;  %s632_s1 = inlined_call_operand.vmem [shape: f32[32,64], index: 1, kind: input, shape index: {}]   ;;  %s633_s0 = inlined_call_operand.vmem [shape: f32[8,32], index: 0, kind: input, shape index: {}]   ;;  %s634_s2 = inlined_call_operand.vmem [shape: f32[1,64], index: 2, kind: input, shape index: {}]   ;;  %s635_s4 = inlined_call_operand.vmem [shape: f32[64,32], index: 4, kind: input, shape index: {}]   ;;  %s636_s3 = inlined_call_operand.vmem [shape: f32[2,64], index: 3, kind: input, shape index: {}]   ;;  %s637_s5 = inlined_call_operand.vmem [shape: f32[1,32], index: 5, kind: input, shape index: {}]   ;;  %s638_s7 = inlined_call_operand.vmem [shape: f32[32,4], index: 7, kind: input, shape index: {}]   ;;  %s639_s6 = inlined_call_operand.vmem [shape: f32[2,32], index: 6, kind: input, shape index: {}]   ;;  %s640_s8 = inlined_call_operand.vmem [shape: f32[1,4], index: 8, kind: input, shape index: {}]   ;;  %s641_s9 = inlined_call_operand.vmem [shape: f32[8,4], index: 9, kind: output, shape index: {0}]   ;;  %s642_s10 = inlined_call_operand.vmem [shape: f32[8,4], index: 10, kind: output, shape index: {1}]  }
   0x1   :  { %439 = vmatprep.subr.bf16.mxu0 %v474_v0  ;;  %v35_v1 = vld [vmem:[%s632_s1] sm:$0xff]  ;;  %v36_v2 = vld [vmem:[%s632_s1 + $0x8] sm:$0xff]  ;;  %v37_v3 = vld [vmem:[%s632_s1 + $0x10] sm:$0xff]  ;;  %406 = vmatprep.mubr.msk.f32.mxu0 %vm475_vm0, %v476_v4  ;;  %vm122_vm2 = vcmask 523264   ;;  %vm347_vm3 = vcmask 31744  }
   0x2   :  { %v440_v5 = vpack.c.bf16 %v36_v2, %v35_v1  ;;  %v38_v6 = vld [vmem:[%s632_s1 + $0x18] sm:$0xff]  ;;  %445 = vmatprep.subr.bf16.mxu1 %v474_v0  ;;  %425 = vmatprep.mubr.msk.f32.mxu1 %vm475_vm0, %v476_v4  ;;  %v34_v8 = vld [vmem:[%s633_s0] sm:$0xff]  ;;  %v149_v20 = vld [vmem:[%s635_s4 + $0x8] sm:$0xff] }
   0x3   :  { %v443_v7 = vpack.c.bf16 %v38_v6, %v37_v3  ;;  %v369_v9 = vld [vmem:[%s634_s2] ss:$0 sm:$0xff]  ;;  %v150_v21 = vld [vmem:[%s635_s4 + $0x10] sm:$0xff]  ;;  %v151_v23 = vld [vmem:[%s635_s4 + $0x18] sm:$0xff] }
   0x4   :  { %441 = vmatpush3.bf16.msra.mxu0 %v440_v5  ;;  %v148_v19 = vld [vmem:[%s635_s4] sm:$0xff]  ;;  %v449_v24 = vpack.c.bf16 %v151_v23, %v150_v21  ;;  %v153_v26 = vld [vmem:[%s635_s4 + $0x28] sm:$0xff]  ;;  %v154_v28 = vld [vmem:[%s635_s4 + $0x30] sm:$0xff] }
   0x5   :  { %442 = vmatprep.subr.bf16.mxu0 %v474_v0  ;;  %v446_v22 = vpack.c.bf16 %v149_v20, %v148_v19  ;;  %v152_v25 = vld [vmem:[%s635_s4 + $0x20] sm:$0xff]  ;;  %v155_v29 = vld [vmem:[%s635_s4 + $0x38] sm:$0xff]  ;;  %v264_v52 = vld [vmem:[%s638_s7 + $0x8] sm:$0xff] }
   0x6   :  { %v452_v27 = vpack.c.bf16 %v153_v26, %v152_v25  ;;  %v455_v30 = vpack.c.bf16 %v155_v29, %v154_v28  ;;  %v371_v35 = vld [vmem:[%s636_s3] ss:$0 sm:$0xff]  ;;  %v372_v37 = vld [vmem:[%s636_s3 + $0x1] ss:$0 sm:$0xff]  ;;  %v265_v54 = vld [vmem:[%s638_s7 + $0x10] sm:$0xff] }
   0x7   :  { %447 = vmatpush3.bf16.msra.mxu1 %v446_v22  ;;  %v373_v41 = vld [vmem:[%s637_s5] ss:$0 sm:$0xff]  ;;  %v266_v55 = vld [vmem:[%s638_s7 + $0x18] sm:$0xff]  ;;  %v376_v63 = vld [vmem:[%s639_s6 + $0x1] ss:$0 sm:$0xff] }
   0x8   :  { %444 = vmatpush3.bf16.msra.mxu0 %v443_v7  ;;  %448 = vmatprep.subr.bf16.mxu1 %v474_v0  ;;  %v263_v51 = vld [vmem:[%s638_s7] sm:$0xff]  ;;  %v461_v56 = vpack.c.bf16 %v266_v55, %v265_v54 }
   0x9   :  { %457 = vmatprep.subr.bf16.mxu0 %v474_v0  ;;  %v458_v53 = vpack.c.bf16 %v264_v52, %v263_v51  ;;  %v375_v61 = vld [vmem:[%s639_s6] ss:$0 sm:$0xff] }
   0xb   :  { %407 = vmatmul.mubr.msk.f32.vlgmr.msra.gmra.mrb[0].mxu0 %vm46_vm1, %v34_v8  ;;  %450 = vmatpush3.bf16.msra.mxu1 %v449_v24 }
   0xc   :  { %436 = vmatprep.mubr.msk.f32.mxu0 %vm475_vm0, %v476_v4  ;;  %451 = vmatprep.subr.bf16.mxu1 %v474_v0 }
   0xd   :  { %459 = vmatpush3.bf16.msra.mxu0 %v458_v53 }
   0xe   :  { %460 = vmatprep.subr.bf16.mxu0 %v474_v0 }
   0xf   :  { %453 = vmatpush3.bf16.msra.mxu1 %v452_v27 }
  0x10   :  { %454 = vmatprep.subr.bf16.mxu1 %v474_v0  ;;  %v377_v0 = vld [vmem:[%s640_s8] ss:$0 sm:$0xff] }
  0x11   :  { %462 = vmatpush3.bf16.msra.mxu0 %v461_v56 }
  0x13   :  { %456 = vmatpush3.bf16.msra.mxu1 %v455_v30 }
  0xde   :  { %v116_v10 = vpop.f32.mrb[0].mxu0 }
  0xdf   :  { %v117_v11 = vadd.f32 %v369_v9, %v116_v10  ;;  %v408_v12 = vpop.f32.mrb[1].mxu0 }
  0xe1   :  { %v123_v13 = vsel %vm122_vm2, %v117_v11, 0.0 }
  0xe2   :  { %124 = vadd.xlane.f32.xlu0 %v123_v13 }
 0x16f   :  { %v125_v14 = vpop.xlane.xlu0 %124 }
 0x170   :  { %v127_v15 = vmul.f32 0.015625, %v125_v14 }
 0x172   :  { %v128_v16 = vsub.f32 %v117_v11, %v127_v15 }
 0x174   :  { %v129_v17 = vmul.f32 %v128_v16, %v128_v16 }
 0x176   :  { %v130_v18 = vsel %vm122_vm2, %v129_v17, 0.0 }
 0x177   :  { %131 = vadd.xlane.f32.xlu0 %v130_v18 }
 0x204   :  { %v132_v31 = vpop.xlane.xlu0 %131 }
 0x205   :  { %v133_v32 = vmul.f32 0.015625, %v132_v31 }
 0x207   :  { %v134_v33 = vadd.f32 1e-05, %v133_v32 }
 0x209   :  { %466 = vrsqrt.f32 %v134_v33 }
 0x213   :  { %v467_v34 = vpop.eup %466 }
 0x214   :  { %v136_v36 = vmul.f32 %v467_v34, %v128_v16 }
 0x216   :  { %v141_v38 = vmul.f32 %v371_v35, %v136_v36 }
 0x218   :  { %v146_v39 = vadd.f32 %v372_v37, %v141_v38 }
 0x21a   :  { %v147_v40 = vmax.f32 %v146_v39, 0.0 }
 0x21c   :  { %426 = vmatmul.mubr.msk.f32.vlgmr.msra.gmra.mrb[0].mxu1 %vm122_vm2, %v147_v40 }
 0x2ef   :  { %v232_v42 = vpop.f32.mrb[0].mxu1 }
 0x2f0   :  { %v233_v43 = vadd.f32 %v373_v41, %v232_v42  ;;  %v427_v44 = vpop.f32.mrb[1].mxu1 }
 0x2f2   :  { %v238_v45 = vsel %vm46_vm1, %v233_v43, 0.0 }
 0x2f3   :  { %239 = vadd.xlane.f32.xlu1 %v238_v45 }
 0x380   :  { %v240_v46 = vpop.xlane.xlu1 %239 }
 0x381   :  { %v242_v47 = vmul.f32 0.03125, %v240_v46 }
 0x383   :  { %v243_v48 = vsub.f32 %v233_v43, %v242_v47 }
 0x385   :  { %v244_v49 = vmul.f32 %v243_v48, %v243_v48 }
 0x387   :  { %v245_v50 = vsel %vm46_vm1, %v244_v49, 0.0 }
 0x388   :  { %246 = vadd.xlane.f32.xlu1 %v245_v50 }
 0x415   :  { %v247_v57 = vpop.xlane.xlu1 %246 }
 0x416   :  { %v248_v58 = vmul.f32 0.03125, %v247_v57 }
 0x418   :  { %v249_v59 = vadd.f32 1e-05, %v248_v58 }
 0x41a   :  { %468 = vrsqrt.f32 %v249_v59 }
 0x424   :  { %v469_v60 = vpop.eup %468 }
 0x425   :  { %v251_v62 = vmul.f32 %v469_v60, %v243_v48 }
 0x427   :  { %v256_v1 = vmul.f32 %v375_v61, %v251_v62 }
 0x429   :  { %v261_v2 = vadd.f32 %v376_v63, %v256_v1 }
 0x42b   :  { %v262_v3 = vmax.f32 %v261_v2, 0.0 }
 0x42d   :  { %437 = vmatmul.mubr.msk.f32.vlgmr.msra.gmra.mrb[2].mxu0 %vm46_vm1, %v262_v3 }
 0x500   :  { %v343_v4 = vpop.f32.mrb[2].mxu0 }
 0x501   :  { %v344_v5 = vadd.f32 %v377_v0, %v343_v4  ;;  %v438_v6 = vpop.f32.mrb[3].mxu0 }
 0x503   :  { %v349_v7 = vsel %vm347_vm3, %v344_v5, -inf  ;;  %348 = vst.msk [vmem:[%s641_s9] sm:$0xff] %vm347_vm3, %v344_v5 }
 0x504   :  { %350 = vmax.xlane.f32.xlu0 %v349_v7 }
 0x591   :  { %v351_v8 = vpop.xlane.xlu0 %350 }
 0x592   :  { %v352_v9 = vsub.f32 %v344_v5, %v351_v8 }
 0x594   :  { %v353_v10 = vmul.f32 1.442695, %v352_v9 }
 0x596   :  { %470 = vpow2.f32 %v353_v10 }
 0x5a0   :  { %v471_v11 = vpop.eup %470 }
 0x5a1   :  { %v355_v12 = vsel %vm347_vm3, %v471_v11, 0.0 }
 0x5a2   :  { %356 = vadd.xlane.f32.xlu1 %v355_v12 }
 0x62f   :  { %v357_v13 = vpop.xlane.xlu1 %356 }
 0x630   :  { %472 = vrcp.f32 %v357_v13 }
 0x63a   :  { %v473_v14 = vpop.eup %472 }
 0x63b   :  { %v359_v15 = vmul.f32 %v473_v14, %v471_v11 }
 0x63d   :  { %360 = vst.msk [vmem:[%s642_s10] sm:$0xff] %vm347_vm3, %v359_v15 }

</bundles_post_ra>
